<compile_context>
chip_gen: v6e
topology: v6e:2x2x1
jax: 0.10.0
libtpu: 0.0.40
codegen_flags: <defaults>
</compile_context>

<pallas_src>
import numpy as np
import jax
import jax.numpy as jnp
from jax import lax
from jax.experimental import pallas as pl
from jax.experimental.pallas import tpu as pltpu


def _round_up(x: int, m: int) -> int:
    return (x + m - 1) // m * m


def create_mask_np(size: int, class_num: int) -> np.ndarray:
    """Matches SimMinLossv2.create_mask: True everywhere except NxN blocks on
    the diagonal (N = size // class_num). Returned as float32 (1.0 = True)."""
    mask = np.ones((size, size), dtype=np.float32)
    n = size // class_num
    for i in range(0, size, n):
        if i + n <= size:
            mask[i:i + n, i:i + n] = 0.0
    return mask


# ---------------------------------------------------------------------------
# Generation-aware VMEM budgeting helpers.
# ---------------------------------------------------------------------------
def _tpu_vmem_capacity_bytes() -> int:
    try:
        info = pltpu.get_tpu_info()
        cap = int(getattr(info, "vmem_capacity_bytes", 0))
        if cap > 0:
            return cap
    except Exception:
        pass
    # v7x (64 MiB per TensorCore) is the most constrained generation; assuming
    # it is always safe on v5e/v6e (128 MiB).
    return 64 << 20


def _vmem_limit_bytes(cap_bytes: int, est_bytes: int) -> int:
    limit = max(est_bytes + (8 << 20), 32 << 20)
    limit = min(limit, max(cap_bytes - (4 << 20), est_bytes + (2 << 20)))
    return int(limit)


def _stage1_vmem_bytes(rt: int, m_pad: int, c: int) -> int:
    ins = 2 * (rt * c + m_pad * c + rt * m_pad)       # double-buffered inputs
    outs = 2 * (rt * c + rt * m_pad)                  # double-buffered outputs
    interm = m_pad * c + 2 * rt * m_pad               # full_n + w/mm temporaries
    return (ins + outs + interm) * 4


def _stage2_vmem_bytes(tb: int, m: int, c: int, m_pad: int) -> int:
    emb_blk = 2 * tb * m * c                          # double-buffered emb block
    const_in = 2 * (m_pad * c + m_pad * m_pad)        # cls_n + mm (still 2 bufs)
    interm = 2 * m * m_pad + m * c                    # s/loss + emb_bn per iter
    out = 2 * 8 * 128
    return (emb_blk + const_in + interm + out) * 4
# TODO(synk): pipeline_mode=pl.Buffered(1) on the constant-index cls_n/mm specs
# would free one of their two VMEM buffers and allow a slightly larger tb.


def _choose_row_tile(m_pad: int) -> int:
    for cand in (512, 256, 128):
        if m_pad % cand == 0 and m_pad // cand >= 2:
            return cand
    return m_pad


def _choose_tb(batch: int, m: int, c: int, m_pad: int, budget_bytes: int) -> int:
    """Largest divisor of `batch` whose stage-2 footprint fits the VMEM budget,
    while keeping >= 2 grid steps (so the "parallel" axis feeds both v7x TCs)."""
    min_steps = 2 if batch >= 2 else 1
    best = 1
    for cand in range(1, batch + 1):
        if batch % cand or (batch // cand) < min_steps:
            continue
        if _stage2_vmem_bytes(cand, m, c, m_pad) <= budget_bytes:
            best = cand
    return best


# ---------------------------------------------------------------------------
# Stage 1: batch-invariant classifier work, tiled over row blocks of w / mm.
# ---------------------------------------------------------------------------
def _make_prep_kernel(mxu_dtype):
    def kernel(cls_row_ref, cls_full_ref, mask_ref, clsn_ref, mm_ref):
        row = cls_row_ref[...]                         # (rt, C)  row block
        full = cls_full_ref[...]                       # (m_pad, C) resident copy
        # F.normalize(p=2): x / max(||x||_2, 1e-12).  Zero-padded rows -> 0.
        row_n = row / jnp.maximum(
            jnp.sqrt(jnp.sum(row * row, axis=-1, keepdims=True)), 1e-12)
        # full_n is recomputed per row-block step; it is O(m_pad*C) and trivial
        # compared to the O(rt*m_pad*C) matmul below.
        full_n = full / jnp.maximum(
            jnp.sqrt(jnp.sum(full * full, axis=-1, keepdims=True)), 1e-12)
        clsn_ref[...] = row_n
        # w row block = cls_n[rows] @ cls_n^T (contract last dims of both ->
        # straight onto the MXU, no transpose copy).
        w = lax.dot_general(row_n.astype(mxu_dtype), full_n.astype(mxu_dtype),
                            dimension_numbers=(((1,), (1,)), ((), ())),
                            preferred_element_type=jnp.float32)
        w = jnp.clip(w, 0.0005, 0.9995)
        # Premasked margin: exp(0.3*w + 0.7) * mask (mask also zeroes padding).
        mm_ref[...] = jnp.exp(w * 0.3 + 0.7) * mask_ref[...]
    return kernel


# ---------------------------------------------------------------------------
# Stage 2: per-batch-block partial loss sums.
# ---------------------------------------------------------------------------
def _make_loss_kernel(tb: int, m: int, mxu_dtype):
    def kernel(clsn_ref, mm_ref, emb_ref, out_ref):
        # Per-batch loop bounds the live s/loss intermediate at ~M*m_pad f32
        # regardless of how large the embedded block (tb) is.
        def body(b, acc):
            emb_b = emb_ref[b]                                     # (M, C)
            emb_bn = emb_b / jnp.maximum(
                jnp.sqrt(jnp.sum(emb_b * emb_b, axis=-1, keepdims=True)), 1e-12)
            # s[n, m] = <emb_n[b, n], cls_n[m]>  == reference s[m, n]
            s = lax.dot_general(emb_bn.astype(mxu_dtype),
                                clsn_ref[...].astype(mxu_dtype),
                                dimension_numbers=(((1,), (1,)), ((), ())),
                                preferred_element_type=jnp.float32)
            # Clip-before-mask is valid only because masked entries are
            # multiplied by 0 (mm) afterwards; margin*mask symmetry makes the
            # emb-major [n, m] indexing equal the reference cls-major [m, n].
            s = jnp.clip(s, 0.0005, 0.9995)
            loss = -jnp.log(1.0 - s) * mm_ref[pl.ds(0, m), :]      # (M, m_pad)
            return acc + jnp.sum(loss)
        acc = lax.fori_loop(0, tb, body, jnp.zeros((8, 128), jnp.float32),
                            unroll=bool(tb <= 8))
        # Lane-dense per-step partial tile (unmasked vst); reduced outside.
        out_ref[...] = acc[None, :, :]
    return kernel


# ---------------------------------------------------------------------------
# Wrapper.
# ---------------------------------------------------------------------------
def sim_min_loss_v2(embedded, cls_weight, class_num, num_queries,
                    use_bf16_matmul=False):
    """embedded: (B, M, C) f32, cls_weight: (class_num, C) f32. Returns scalar."""
    B, M, C = embedded.shape
    assert num_queries == M, "masked_fill in reference requires num_queries == M"
    cls_rows = cls_weight.shape[0]
    assert num_queries % cls_rows == 0, "num_queries must divide by class rows"
    repeat_num = num_queries // cls_rows

    # repeat_interleave of classifier rows (glue; pure indexing).
    cls_rep = jnp.repeat(cls_weight.astype(jnp.float32), repeat_num, axis=0)

    # Lane-dense M padding applied to the SMALL classifier-side arrays only;
    # round to 128 for realistic num_queries, keep 8 for tiny M where the
    # mm / matmul-N blow-up would dominate.
    m_pad = _round_up(M, 8) if M < 64 else _round_up(M, 128)

    mask_np = create_mask_np(M, class_num)                 # (M, M) unpadded
    # The emb-major orientation in stage 2 relies on margin*mask symmetry.
    assert np.array_equal(mask_np, mask_np.T), "mask must be symmetric"
    count = float(mask_np.sum()) * B                       # masked_select count
    mask_pad = np.zeros((m_pad, m_pad), dtype=np.float32)
    mask_pad[:M, :M] = mask_np

    cls_p = jnp.zeros((m_pad, C), jnp.float32).at[:M, :].set(cls_rep)

    mxu_dtype = jnp.bfloat16 if use_bf16_matmul else jnp.float32
    cap = _tpu_vmem_capacity_bytes()

    # ---- Stage 1: batch-invariant prep, tiled over row blocks of w/mm ----
    rt = _choose_row_tile(m_pad)
    cls_n, mm = pl.pallas_call(
        _make_prep_kernel(mxu_dtype),
        out_shape=(jax.ShapeDtypeStruct((m_pad, C), jnp.float32),
                   jax.ShapeDtypeStruct((m_pad, m_pad), jnp.float32)),
        grid=(m_pad // rt,),
        in_specs=[pl.BlockSpec((rt, C), lambda i: (i, 0)),       # row block
                  pl.BlockSpec((m_pad, C), lambda i: (0, 0)),    # full (resident)
                  pl.BlockSpec((rt, m_pad), lambda i: (i, 0))],  # mask row block
        out_specs=(pl.BlockSpec((rt, C), lambda i: (i, 0)),
                   pl.BlockSpec((rt, m_pad), lambda i: (i, 0))),
        compiler_params=pltpu.CompilerParams(
            dimension_semantics=("parallel",),
            vmem_limit_bytes=_vmem_limit_bytes(
                cap, _stage1_vmem_bytes(rt, m_pad, C))),
    )(cls_p, cls_p, jnp.asarray(mask_pad))

    # ---- Stage 2: independent per-step partial sums (parallel grid) ----
    budget = (cap * 45) // 100            # ~29 MiB on v7x, ~58 MiB on v5e/v6e
    tb = _choose_tb(B, M, C, m_pad, budget)
    steps = B // tb
    parts = pl.pallas_call(
        _make_loss_kernel(tb, M, mxu_dtype),
        out_shape=jax.ShapeDtypeStruct((steps, 8, 128), jnp.float32),
        grid=(steps,),
        in_specs=[pl.BlockSpec((m_pad, C), lambda g: (0, 0)),        # cls_n
                  pl.BlockSpec((m_pad, m_pad), lambda g: (0, 0)),    # margin*mask
                  # embedded streamed UNPADDED: last two dims == full array dims
                  pl.BlockSpec((tb, M, C), lambda g: (g, 0, 0))],
        out_specs=pl.BlockSpec((1, 8, 128), lambda g: (g, 0, 0)),
        compiler_params=pltpu.CompilerParams(
            dimension_semantics=("parallel",),
            vmem_limit_bytes=_vmem_limit_bytes(
                cap, _stage2_vmem_bytes(tb, M, C, m_pad))),
    )(cls_n, mm, embedded.astype(jnp.float32))

    total = jnp.sum(parts[:, 0, 0])
    return total / count                                   # reduction == 'mean'


def sim_min_loss_v2_ref(embedded, cls_weight, class_num, num_queries):
    """Pure-JAX reference mirroring the PyTorch forward (for verification)."""
    B, M, C = embedded.shape
    mask = jnp.asarray(create_mask_np(M, class_num))
    eps = 1e-12
    cls_n = cls_weight / jnp.maximum(
        jnp.linalg.norm(cls_weight, axis=1, keepdims=True), eps)
    repeat_num = num_queries // cls_weight.shape[0]
    classifier = jnp.repeat(cls_n, repeat_num, axis=0)            # (M, C)
    emb_n = embedded / jnp.maximum(
        jnp.linalg.norm(embedded, axis=-1, keepdims=True), eps)
    s = jnp.einsum('mc,bnc->bmn', classifier, emb_n)
    s = jnp.clip(s, 0.0005, 0.9995)
    usm = s * mask[None]
    w = jnp.clip(classifier @ classifier.T, 0.0005, 0.9995)
    margin = jnp.exp(w * 0.3 + 0.7)
    loss = -jnp.log(1.0 - usm) * margin[None]
    total = jnp.sum(loss * mask[None])
    count = B * jnp.sum(mask)
    return total / count


if __name__ == "__main__":
    # Small shapes consistent with the module: B=2 batches, M=num_queries=8
    # content queries, C=32 hidden dim, class_num=4 classes (repeat_num=2).
    B, M, C = 2, 8, 32
    class_num = 4
    num_queries = M

    key = jax.random.PRNGKey(0)
    k_emb, k_cls = jax.random.split(key)
    embedded = jax.random.normal(k_emb, (B, M, C), dtype=jnp.float32)
    cls_weight = jax.random.normal(k_cls, (class_num, C), dtype=jnp.float32)

    loss = sim_min_loss_v2(embedded, cls_weight, class_num, num_queries)
    loss = jax.block_until_ready(loss)

    ref = jax.block_until_ready(
        sim_min_loss_v2_ref(embedded, cls_weight, class_num, num_queries))
    assert np.allclose(np.asarray(loss), np.asarray(ref), rtol=1e-5, atol=1e-5), \
        f"mismatch: pallas={loss} ref={ref}"

    print("KERNEL_OK")
</pallas_src>

<mosaic_0001>
module attributes {stable_mosaic.version = 11 : i64} {
  func.func @kernel(%arg0: i32, %arg1: memref<8x32xf32, #tpu.memory_space<vmem>>, %arg2: memref<8x32xf32, #tpu.memory_space<vmem>>, %arg3: memref<8x8xf32, #tpu.memory_space<vmem>>, %arg4: memref<8x32xf32, #tpu.memory_space<vmem>>, %arg5: memref<8x8xf32, #tpu.memory_space<vmem>>) attributes {dimension_semantics = [#tpu.dimension_semantics<parallel>], iteration_bounds = array<i64: 1>, scalar_prefetch = 0 : i64, scratch_operands = 0 : i64, tpu.core_type = #tpu.core_type<tc>, window_params = [{transform_indices = @transform_0, window_bounds = array<i64: 8, 32>}, {pipeline_mode = #tpu.pipeline_mode<synchronous>, transform_indices = @transform_1, window_bounds = array<i64: 8, 32>}, {transform_indices = @transform_2, window_bounds = array<i64: 8, 8>}, {transform_indices = @transform_3, window_bounds = array<i64: 8, 32>}, {transform_indices = @transform_4, window_bounds = array<i64: 8, 8>}]} {
    %c0 = arith.constant 0 : index
    %c0_0 = arith.constant 0 : index
    %0 = vector.load %arg1[%c0, %c0_0] : memref<8x32xf32, #tpu.memory_space<vmem>>, vector<8x32xf32>
    %c0_1 = arith.constant 0 : index
    %c0_2 = arith.constant 0 : index
    %1 = vector.load %arg2[%c0_1, %c0_2] : memref<8x32xf32, #tpu.memory_space<vmem>>, vector<8x32xf32>
    %2 = arith.mulf %0, %0 : vector<8x32xf32>
    %cst = arith.constant dense<0.000000e+00> : vector<8xf32>
    %3 = vector.multi_reduction <add>, %2, %cst [1] : vector<8x32xf32> to vector<8xf32>
    %4 = vector.shape_cast %3 : vector<8xf32> to vector<8x1xf32>
    %5 = math.sqrt %4 : vector<8x1xf32>
    %cst_3 = arith.constant 9.99999996E-13 : f32
    %6 = vector.broadcast %cst_3 : f32 to vector<8x1xf32>
    %7 = arith.maximumf %5, %6 : vector<8x1xf32>
    %8 = vector.broadcast %7 : vector<8x1xf32> to vector<8x32xf32>
    %9 = arith.divf %0, %8 : vector<8x32xf32>
    %10 = arith.mulf %1, %1 : vector<8x32xf32>
    %cst_4 = arith.constant dense<0.000000e+00> : vector<8xf32>
    %11 = vector.multi_reduction <add>, %10, %cst_4 [1] : vector<8x32xf32> to vector<8xf32>
    %12 = vector.shape_cast %11 : vector<8xf32> to vector<8x1xf32>
    %13 = math.sqrt %12 : vector<8x1xf32>
    %cst_5 = arith.constant 9.99999996E-13 : f32
    %14 = vector.broadcast %cst_5 : f32 to vector<8x1xf32>
    %15 = arith.maximumf %13, %14 : vector<8x1xf32>
    %16 = vector.broadcast %15 : vector<8x1xf32> to vector<8x32xf32>
    %17 = arith.divf %1, %16 : vector<8x32xf32>
    %c0_6 = arith.constant 0 : index
    %c0_7 = arith.constant 0 : index
    %18 = vector.load %arg4[%c0_6, %c0_7] : memref<8x32xf32, #tpu.memory_space<vmem>>, vector<8x32xf32>
    tpu.vector_store %arg4[%c0_6, %c0_7], %9 {strides = array<i32>} : memref<8x32xf32, #tpu.memory_space<vmem>>, vector<8x32xf32>,
    %cst_8 = arith.constant dense<0.000000e+00> : vector<8x8xf32>
    %19 = tpu.matmul %9, %17, %cst_8 {dimension_numbers = #tpu.dot_dimension_numbers<[1], [1], [0], [0], [0, 0, 1, 0], [], []>} : vector<8x32xf32>, vector<8x32xf32>, vector<8x8xf32> -> vector<8x8xf32>
    %cst_9 = arith.constant 5.000000e-04 : f32
    %cst_10 = arith.constant 0.999499976 : f32
    %20 = vector.broadcast %cst_9 : f32 to vector<8x8xf32>
    %21 = arith.maximumf %20, %19 : vector<8x8xf32>
    %22 = vector.broadcast %cst_10 : f32 to vector<8x8xf32>
    %23 = arith.minimumf %22, %21 : vector<8x8xf32>
    %cst_11 = arith.constant 3.000000e-01 : f32
    %24 = vector.broadcast %cst_11 : f32 to vector<8x8xf32>
    %25 = arith.mulf %23, %24 : vector<8x8xf32>
    %cst_12 = arith.constant 0.699999988 : f32
    %26 = vector.broadcast %cst_12 : f32 to vector<8x8xf32>
    %27 = arith.addf %25, %26 : vector<8x8xf32>
    %28 = math.exp %27 : vector<8x8xf32>
    %c0_13 = arith.constant 0 : index
    %c0_14 = arith.constant 0 : index
    %29 = vector.load %arg3[%c0_13, %c0_14] : memref<8x8xf32, #tpu.memory_space<vmem>>, vector<8x8xf32>
    %30 = arith.mulf %28, %29 : vector<8x8xf32>
    %c0_15 = arith.constant 0 : index
    %c0_16 = arith.constant 0 : index
    %31 = vector.load %arg5[%c0_15, %c0_16] : memref<8x8xf32, #tpu.memory_space<vmem>>, vector<8x8xf32>
    tpu.vector_store %arg5[%c0_15, %c0_16], %30 {strides = array<i32>} : memref<8x8xf32, #tpu.memory_space<vmem>>, vector<8x8xf32>,
    return
  }
  func.func @transform_0(%arg0: i32) -> (i32, i32) {
    %c0_i32 = arith.constant 0 : i32
    %c0_i32_0 = arith.constant 0 : i32
    return %arg0, %c0_i32 : i32, i32
  }
  func.func @transform_1(%arg0: i32) -> (i32, i32) {
    %c0_i32 = arith.constant 0 : i32
    %c0_i32_0 = arith.constant 0 : i32
    %c0_i32_1 = arith.constant 0 : i32
    return %c0_i32, %c0_i32_0 : i32, i32
  }
  func.func @transform_2(%arg0: i32) -> (i32, i32) {
    %c0_i32 = arith.constant 0 : i32
    %c0_i32_0 = arith.constant 0 : i32
    return %arg0, %c0_i32 : i32, i32
  }
  func.func @transform_3(%arg0: i32) -> (i32, i32) {
    %c0_i32 = arith.constant 0 : i32
    %c0_i32_0 = arith.constant 0 : i32
    return %arg0, %c0_i32 : i32, i32
  }
  func.func @transform_4(%arg0: i32) -> (i32, i32) {
    %c0_i32 = arith.constant 0 : i32
    %c0_i32_0 = arith.constant 0 : i32
    return %arg0, %c0_i32 : i32, i32
  }
}

</mosaic_0001>

<bundles_post_ra>
// kernel: tpu_custom_call.1
= control target key start
LH: loop header
LB: loop body
LE: loop exit
PB: predicated region body
PF: predicated region fallthrough
CT: control target
= control target key end

     0   :  { %10 = vsyncpa [#allocation3], 0  ;;  %s387_s0 = inlined_call_operand.hbm [shape: f32[8,32], index: 0, kind: input, shape index: {}]   ;;  %s388_s1 = inlined_call_operand.hbm [shape: f32[8,32], index: 1, kind: input, shape index: {}]   ;;  %s389_s2 = inlined_call_operand.hbm [shape: f32[8,8], index: 2, kind: input, shape index: {}]   ;;  %s390_s3 = inlined_call_operand.hbm [shape: f32[8,32], index: 3, kind: output, shape index: {0}]   ;;  %s391_s4 = inlined_call_operand.hbm [shape: f32[8,8], index: 4, kind: output, shape index: {1}]  }
   0x1   :  { %11 = vsyncpa [#allocation6], 0 }
   0x2   :  { %12 = vsyncpa [#allocation4], 0 }
   0x3   :  { %13 = vsyncpa [#allocation10], 0  ;;  %s335_s15 = smov [#allocation5]   ;;  %s336_s17 = smov [#allocation2]  }
   0x4   :  { %s30_s16 = sshll.u32 %s335_s15, 4  ;;  %s20_s18 = sshll.u32 %s336_s17, 4  ;;  %s31_s16 = int_to_ptr.vmem [resolvable:$true] %s30_s16  ;;  %s21_s18 = int_to_ptr.vmem [resolvable:$true] %s20_s18 }
   0x5   :  { %s235_s19 = scalar_lea.vmem %s31_s16, 128  ;;  %p240_p1 = scmp.lt.s32.totalorder %s31_s16, %s31_s16 }
   0x6   :  { %p236_p0 = scmp.ne.s32.totalorder %s31_s16, %s235_s19  ;;  %p241_p2 = scmp.lt.s32.totalorder %s235_s19, %s235_s19 }
   0x8   :  { %p242_p3 = por %p241_p2, %p240_p1 }
   0xa   :  { %p243_p4 = pnand %p242_p3, %p236_p0 }
   0xc   :  { %246 = shalt.err (!%p243_p4)
}
   0xd   :  { %33 = dma.hbm_to_vmem [thread:$0]  %s388_s1, 128, %s31_s16, [#allocation6]  }
   0xe   :  { %s255_s22 = scalar_lea.vmem %s21_s18, 128  ;;  %p260_p6 = scmp.lt.s32.totalorder %s21_s18, %s21_s18 }
   0xf   :  { %p256_p5 = scmp.ne.s32.totalorder %s21_s18, %s255_s22  ;;  %p261_p7 = scmp.lt.s32.totalorder %s255_s22, %s255_s22 }
  0x11   :  { %p262_p8 = por %p261_p7, %p260_p6 }
  0x13   :  { %p263_p9 = pnand %p262_p8, %p256_p5 }
  0x15   :  { %266 = shalt.err (!%p263_p9)
}
  0x16   :  { %23 = dma.hbm_to_vmem [thread:$0]  %s387_s0, 128, %s21_s18, [#allocation3]  }
  0x17   :  { %s337_s25 = smov [#allocation7]  }
  0x18   :  { %s40_s26 = sshll.u32 %s337_s25, 4  ;;  %s41_s26 = int_to_ptr.vmem [resolvable:$true] %s40_s26 }
  0x19   :  { %s275_s27 = scalar_lea.vmem %s41_s26, 128  ;;  %p280_p11 = scmp.lt.s32.totalorder %s41_s26, %s41_s26 }
  0x1a   :  { %p276_p10 = scmp.ne.s32.totalorder %s41_s26, %s275_s27  ;;  %p281_p12 = scmp.lt.s32.totalorder %s275_s27, %s275_s27 }
  0x1c   :  { %p282_p13 = por %p281_p12, %p280_p11 }
  0x1e   :  { %p283_p0 = pnand %p282_p13, %p276_p10 }
  0x20   :  { %286 = shalt.err (!%p283_p0)
}
  0x21   :  { %43 = dma.hbm_to_vmem [thread:$0]  %s389_s2, 128, %s41_s26, [#allocation6]  }
  0x22   :  { %327 = dma.done.wait [#allocation3], 128  }
  0x23   :  { %328 = vsyncadd [#allocation3], 4294967168 }
  0x24   :  { %329 = dma.done.wait [#allocation6], 256  }
  0x25   :  { %330 = vsyncadd [#allocation6], 4294967040  ;;  %v54_v0 = vld [vmem:[#allocation5] sm:$0xff]  ;;  %vm56_vm0 = vcmask 261120   ;;  %v53_v1 = vld [vmem:[#allocation2] sm:$0xff]  ;;  %v338_v6 = vmov 0.0  }
  0x26   :  { %v70_v2 = vmul.f32 %v54_v0, %v54_v0  ;;  %v55_v3 = vmul.f32 %v53_v1, %v53_v1  ;;  %205 = vmatprep.subr.mxu0 %v338_v6  ;;  %vm339_vm1 = vmmov 0   ;;  %s340_s0 = smov [#allocation8]  }
  0x27   :  { %207 = vmatprep.mubr.msk.f32.mxu0 %vm339_vm1, %v338_v6  ;;  %s177_s2 = sshll.u32 %s340_s0, 4  ;;  %s178_s2 = int_to_ptr.vmem [resolvable:$true] %s177_s2 }
  0x28   :  { %v71_v4 = vsel %vm56_vm0, %v70_v2, 0.0  ;;  %v57_v5 = vsel %vm56_vm0, %v55_v3, 0.0  ;;  %s287_s29 = scalar_lea.vmem %s178_s2, 128  ;;  %p292_p2 = scmp.lt.s32.totalorder %s178_s2, %s178_s2 }
  0x29   :  { %72 = vadd.xlane.f32.xlu0 %v71_v4  ;;  %p288_p1 = scmp.ne.s32.totalorder %s178_s2, %s287_s29  ;;  %p293_p3 = scmp.lt.s32.totalorder %s287_s29, %s287_s29 }
  0x2b   :  { %p294_p4 = por %p293_p3, %p292_p2 }
  0x2d   :  { %58 = vadd.xlane.f32.xlu0 %v57_v5  ;;  %p295_p5 = pnand %p294_p4, %p288_p1 }
  0xb2   :  { %v73_v7 = vpop.xlane.xlu0 %72 }
  0xb3   :  { %217 = vrsqrt.f32 %v73_v7  ;;  %vm76_vm2 = vcmp.eq.f32.partialorder %v73_v7, inf  ;;  %v79_v11 = vand.u32 2147483648, %v73_v7  ;;  %vm78_vm3 = vcmp.eq.f32.partialorder %v73_v7, 0.0 }
  0xb6   :  { %v59_v8 = vpop.xlane.xlu0 %58 }
  0xb7   :  { %219 = vrsqrt.f32 %v59_v8  ;;  %vm62_vm4 = vcmp.eq.f32.partialorder %v59_v8, inf  ;;  %v65_v17 = vand.u32 2147483648, %v59_v8  ;;  %vm64_vm5 = vcmp.eq.f32.partialorder %v59_v8, 0.0 }
  0xc0   :  { %v218_v9 = vpop.eup %217 }
  0xc1   :  { %v75_v10 = vmul.f32 %v218_v9, %v73_v7 }
  0xc3   :  { %v77_v12 = vsel %vm76_vm2, %v73_v7, %v75_v10 }
  0xc4   :  { %v220_v13 = vpop.eup %219  ;;  %v80_v14 = vsel %vm78_vm3, %v79_v11, %v77_v12 }
  0xc5   :  { %v81_v15 = vmax.f32 %v80_v14, 1e-12  ;;  %v61_v16 = vmul.f32 %v220_v13, %v59_v8 }
  0xc7   :  { %221 = vrcp.f32 %v81_v15  ;;  %v63_v18 = vsel %vm62_vm4, %v59_v8, %v61_v16 }
  0xc8   :  { %v66_v19 = vsel %vm64_vm5, %v65_v17, %v63_v18 }
  0xc9   :  { %v67_v20 = vmax.f32 %v66_v19, 1e-12 }
  0xcb   :  { %223 = vrcp.f32 %v67_v20 }
  0xd4   :  { %v222_v21 = vpop.eup %221 }
  0xd5   :  { %v83_v22 = vmul.f32 %v222_v21, %v54_v0 }
  0xd7   :  { %206 = vmatpush3.xpose.msk.msra.mxu0 %vm56_vm0, %v83_v22 }
  0xd8   :  { %v224_v23 = vpop.eup %223 }
  0xd9   :  { %v69_v24 = vmul.f32 %v224_v23, %v53_v1 }
  0xdb   :  { %208 = vmatmul.mubr.msk.f32.vlgmr.msra.gmra.mxu0 %vm56_vm0, %v69_v24  ;;  %84 = vst.msk [vmem:[#allocation8] sm:$0xff] %vm56_vm0, %v69_v24 }
  0xdc   :  { %298 = shalt.err (!%p295_p5)
}
  0xdd   :  { %180 = dma.vmem_to_hbm [thread:$0]  %s178_s2, 128, %s390_s3, [#allocation4]   ;;  %v167_v32 = vld [vmem:[#allocation7] sm:$0xff]  ;;  %vm169_vm6 = vcmask 64512  }
  0xde   :  { %s341_s6 = smov [#allocation9]  }
  0xdf   :  { %s187_s7 = sshll.u32 %s341_s6, 4  ;;  %s188_s7 = int_to_ptr.vmem [resolvable:$true] %s187_s7 }
  0xe0   :  { %s307_s8 = scalar_lea.vmem %s188_s7, 128  ;;  %p312_p7 = scmp.lt.s32.totalorder %s188_s7, %s188_s7 }
  0xe1   :  { %p308_p6 = scmp.ne.s32.totalorder %s188_s7, %s307_s8  ;;  %p313_p8 = scmp.lt.s32.totalorder %s307_s8, %s307_s8 }
  0xe3   :  { %p314_p9 = por %p313_p8, %p312_p7 }
  0xe5   :  { %p315_p10 = pnand %p314_p9, %p308_p6 }
 0x19b   :  { %v157_v25 = vpop.f32.mrf.mxu0 }
 0x19c   :  { %v161_v26 = vmax.f32 %v157_v25, 0.0005 }
 0x19d   :  { %v209_v27 = vpop.f32.mrf.mxu0 }
 0x19e   :  { %v162_v28 = vmin.f32 %v161_v26, 0.9995 }
 0x1a0   :  { %v163_v29 = vmul.f32 0.3, %v162_v28 }
 0x1a2   :  { %v164_v30 = vadd.f32 0.7, %v163_v29 }
 0x1a4   :  { %v165_v31 = vmul.f32 1.442695, %v164_v30 }
 0x1a6   :  { %225 = vpow2.f32 %v165_v31 }
 0x1b3   :  { %v226_v33 = vpop.eup %225 }
 0x1b4   :  { %v168_v34 = vmul.f32 %v226_v33, %v167_v32 }
 0x1b6   :  { %170 = vst.msk [vmem:[#allocation9] sm:$0xff] %vm169_vm6, %v168_v34 }
 0x1b7   :  { %318 = shalt.err (!%p315_p10)
}
 0x1b8   :  { %190 = dma.vmem_to_hbm [thread:$0]  %s188_s7, 128, %s391_s4, [#allocation10]  }
 0x1b9   :  { %331 = dma.done.wait [#allocation4], 128  }
 0x1ba   :  { %332 = vsyncadd [#allocation4], 4294967168 }
 0x1bb   :  { %333 = dma.done.wait [#allocation10], 128  }
 0x1bc   :  { %334 = vsyncadd [#allocation10], 4294967168 }
 0x1bd   :  { %197 = vsyncpa [#allocation3], 1 }
 0x1be   :  { %198 = vsyncpa [#allocation6], 1 }
 0x1bf   :  { %199 = vsyncpa [#allocation4], 1 }
 0x1c0   :  { %200 = vsyncpa [#allocation10], 1 }

</bundles_post_ra>
